<compile_context>
chip_gen: v7x
topology: tpu7x:2x2x1
jax: 0.10.0
libtpu: 0.0.40
codegen_flags: <defaults>
</compile_context>

<pallas_src>
import functools

import jax
import jax.numpy as jnp
import numpy as np
from jax.experimental import pallas as pl
from jax.experimental.pallas import tpu as pltpu


def undistort_patch_kernel(act_ref, fetch_ref, flat_ref, w4_ref, feat_ref,
                           out_ref, acc_ref, iota_ref, *, W, hw_tile, num_hw_tiles):
    """One (P-tile, HW-tile) grid step.

    act_ref/fetch_ref: SMEM scalar-prefetch tables (flattened (num_p, num_hw))
    flat_ref: (1, Pt)  int32   flat index of the top-left (iy0, ix0) corner
    w4_ref:   (4, Pt)  f32     bilinear weights [00, 01, 10, 11], validity folded in
    feat_ref: (BC, HWt) f32    feature rows for this HW tile
    out_ref:  (BC, Pt)         output tile (resident across the HW reduction axis)
    acc_ref:  (BC, Pt)  f32    VMEM accumulator scratch
    iota_ref: (HWt, Pt) int32  VMEM scratch holding the grid-invariant row iota
    """
    j = pl.program_id(0)
    k = pl.program_id(1)
    is_last = k == pl.num_programs(1) - 1

    @pl.when(k == 0)
    def _():
        # Reduction axis always starts at k == 0 on whichever core owns this j,
        # so this init is megacore-safe.
        iota_ref[...] = jax.lax.broadcasted_iota(jnp.int32, iota_ref.shape, 0)
        acc_ref[...] = jnp.zeros_like(acc_ref)

    active = act_ref[j * num_hw_tiles + k]

    @pl.when(active != 0)
    def _():
        # Fold the k*hw_tile offset into the (1, Pt) side (p_tile-wide subtract)
        # instead of adding it to the whole (HWt, Pt) iota.
        base = flat_ref[...] - k * hw_tile                  # (1, Pt) int32
        delta = iota_ref[...] - base                        # (HWt, Pt) int32

        zero = jnp.float32(0.0)
        # Four compare+selects build the transposed one-hot/bilinear weight tile.
        # Out-of-range corners carry weight 0 (folded in the wrapper), so any column
        # aliasing of invalid corners contributes exactly zero.
        wmat_t = jnp.where(delta == 0, w4_ref[0:1, :], zero)
        wmat_t = wmat_t + jnp.where(delta == 1, w4_ref[1:2, :], zero)
        wmat_t = wmat_t + jnp.where(delta == W, w4_ref[2:3, :], zero)
        wmat_t = wmat_t + jnp.where(delta == W + 1, w4_ref[3:4, :], zero)

        # (BC, HWt) @ (HWt, Pt) -> (BC, Pt) on the MXU.
        res = acc_ref[...] + jnp.dot(feat_ref[...], wmat_t,
                                     preferred_element_type=jnp.float32)

        @pl.when(is_last)
        def _():
            out_ref[...] = res.astype(out_ref.dtype)        # skip final acc round trip

        @pl.when(jnp.logical_not(is_last))
        def _():
            acc_ref[...] = res

    @pl.when((active == 0) & is_last)
    def _():
        out_ref[...] = acc_ref[...].astype(out_ref.dtype)


def _precompute_corner_weights(patches_2d, H, W):
    """Per-sample flat top-left index and the 4 bilinear weights (validity folded).

    Returns flat00: (1, P) int32, w4: (4, P) f32  (lane-dense, P on the last axis).
    """
    g = patches_2d.reshape(-1, 2).astype(jnp.float32)
    gx, gy = g[:, 0], g[:, 1]

    # align_corners=True mapping of normalized [-1, 1] coords to pixel coords.
    ix = (gx + 1.0) * 0.5 * (W - 1)
    iy = (gy + 1.0) * 0.5 * (H - 1)
    ix0 = jnp.floor(ix)
    iy0 = jnp.floor(iy)
    ix1 = ix0 + 1.0
    iy1 = iy0 + 1.0
    wx1 = ix - ix0
    wx0 = 1.0 - wx1
    wy1 = iy - iy0
    wy0 = 1.0 - wy1

    def valid(xc, yc):
        return ((xc >= 0.0) & (xc <= W - 1.0) &
                (yc >= 0.0) & (yc <= H - 1.0)).astype(jnp.float32)

    # Corner order matches kernel deltas: 0 -> (iy0,ix0), 1 -> (iy0,ix1),
    # W -> (iy1,ix0), W+1 -> (iy1,ix1).  Zero padding = zero the WEIGHT (not the
    # index), so aliased out-of-range corners contribute nothing.
    w00 = wx0 * wy0 * valid(ix0, iy0)
    w01 = wx1 * wy0 * valid(ix1, iy0)
    w10 = wx0 * wy1 * valid(ix0, iy1)
    w11 = wx1 * wy1 * valid(ix1, iy1)

    flat00 = (iy0.astype(jnp.int32) * W + ix0.astype(jnp.int32))[None, :]  # (1, P)
    w4 = jnp.stack([w00, w01, w10, w11], axis=0)                           # (4, P)
    return flat00, w4


def _round_up(x, m):
    return ((x + m - 1) // m) * m


def _default_tile(total, target, prefer_split=False):
    """Tile size: multiple of 128, <= target, independent of divisibility (we pad)."""
    t = _round_up(min(max(total, 1), target), 128)
    if prefer_split:
        # Keep >= 2 tiles along this (parallel) axis when the axis allows it, so
        # v7x's 2 TensorCores both get work.
        total128 = _round_up(total, 128)
        if total128 >= 256:
            t = min(t, max(128, (total128 // 2) // 128 * 128))
    return t


def undistort_patch_forward(x, patches_2d, *, p_tile=None, hw_tile=None):
    """x: (B, C, H, W) float32 (NCHW), patches_2d: (N, Hp, Wp, 2) normalized coords.

    Returns (B, N, C, Hp, Wp) — identical semantics to
    torch.nn.functional.grid_sample(..., align_corners=True) per patch."""
    B, C, H, W = x.shape
    N, Hp, Wp, _ = patches_2d.shape
    P = N * Hp * Wp
    HW = H * W
    BC = B * C

    if p_tile is None:
        p_tile = _default_tile(P, 512, prefer_split=True)
    if hw_tile is None:
        hw_tile = _default_tile(HW, 512)

    P_pad = _round_up(P, p_tile)
    HW_pad = _round_up(HW, hw_tile)
    num_p_tiles = P_pad // p_tile
    num_hw_tiles = HW_pad // hw_tile

    feat = x.reshape(BC, HW)                      # pure reshape, no HBM transpose
    if HW_pad != HW:
        # Padded rows can only ever match zero-weight corners -> zeros are safe.
        feat = jnp.pad(feat, ((0, 0), (0, HW_pad - HW)))

    flat00, w4 = _precompute_corner_weights(patches_2d, H, W)
    if P_pad != P:
        flat00 = jnp.pad(flat00, ((0, 0), (0, P_pad - P)), mode="edge")
        w4 = jnp.pad(w4, ((0, 0), (0, P_pad - P)))           # zero weights in the pad

    # --- activity / fetch tables for scalar prefetch -------------------------
    # Columns of P-tile j only tap rows in [min(flat00), max(flat00)+W+1]; an HW
    # tile that misses this span contributes an all-zero weight matrix.
    flat_tiles = flat00.reshape(num_p_tiles, p_tile)
    lo = jnp.min(flat_tiles, axis=1)                          # (num_p,)
    hi = jnp.max(flat_tiles, axis=1) + (W + 1)                # (num_p,)
    k_start = jnp.arange(num_hw_tiles, dtype=jnp.int32) * hw_tile
    k_end = k_start + (hw_tile - 1)
    active = (k_start[None, :] <= hi[:, None]) & (k_end[None, :] >= lo[:, None])

    # fetch[j, k]: block index of the feature tile to have resident at step (j, k).
    # Inactive steps repeat the previous index so Pallas skips the DMA entirely.
    ks = jnp.arange(num_hw_tiles, dtype=jnp.int32)
    fetch = jnp.where(active, ks[None, :], -1)
    fetch = jax.lax.cummax(fetch, axis=1)
    fetch = jnp.maximum(fetch, 0).astype(jnp.int32)

    active_flat = active.astype(jnp.int32).reshape(-1)        # 1-D: cheap SMEM layout
    fetch_flat = fetch.reshape(-1)

    # --- cost estimate & VMEM budget ------------------------------------------
    itemsize = jnp.dtype(x.dtype).itemsize
    cost = pl.CostEstimate(
        flops=2 * BC * HW_pad * P_pad,
        transcendentals=0,
        bytes_accessed=int(BC * HW_pad * itemsize * num_p_tiles   # feat once per P tile
                           + BC * P_pad * itemsize                # output
                           + (flat00.size + w4.size) * 4 * num_hw_tiles),
    )

    vmem_needed = 4 * (2 * BC * hw_tile        # feat double buffer
                       + 2 * BC * p_tile       # out double buffer
                       + BC * p_tile           # accumulator scratch
                       + 4 * hw_tile * p_tile  # iota scratch + delta/wmat temporaries
                       + 2 * 5 * p_tile)       # flat00 + w4 double buffers
    vmem_limit = int(max(vmem_needed + (4 << 20), 32 << 20))
    try:
        vmem_limit = min(vmem_limit, int(pltpu.get_tpu_info().vmem_capacity_bytes))
    except Exception:
        vmem_limit = min(vmem_limit, 64 << 20)                # v7x physical floor

    kernel = functools.partial(undistort_patch_kernel, W=W, hw_tile=hw_tile,
                               num_hw_tiles=num_hw_tiles)

    out = pl.pallas_call(
        kernel,
        out_shape=jax.ShapeDtypeStruct((BC, P_pad), x.dtype),
        grid_spec=pltpu.PrefetchScalarGridSpec(
            num_scalar_prefetch=2,
            grid=(num_p_tiles, num_hw_tiles),                 # (P tiles, HW tiles)
            in_specs=[
                pl.BlockSpec((1, p_tile), lambda j, k, act, ftab: (0, j)),   # flat00
                pl.BlockSpec((4, p_tile), lambda j, k, act, ftab: (0, j)),   # weights
                pl.BlockSpec((BC, hw_tile),                                  # features
                             lambda j, k, act, ftab:
                             (0, ftab[j * num_hw_tiles + k])),
            ],
            out_specs=pl.BlockSpec((BC, p_tile), lambda j, k, act, ftab: (0, j)),
            scratch_shapes=[pltpu.VMEM((BC, p_tile), jnp.float32),
                            pltpu.VMEM((hw_tile, p_tile), jnp.int32)],
        ),
        compiler_params=pltpu.CompilerParams(
            dimension_semantics=("parallel", "arbitrary"),
            vmem_limit_bytes=vmem_limit),
        cost_estimate=cost,
    )(active_flat, fetch_flat, flat00, w4, feat)

    out = out[:, :P].reshape(B, C, N, Hp, Wp)
    out = jnp.transpose(out, (0, 2, 1, 3, 4))                 # (B, N, C, Hp, Wp)
    return out


def make_synthetic_patches(key, n_patches, hp, wp):
    # TODO(synk): the real module builds patches_2d from a fisheye camera calibration
    # file (FishEyeCameraCalibrated + camera_param_path); no clean in-script equivalent,
    # so we construct a deterministic synthetic set of normalized sampling patches.
    cx = jnp.linspace(-0.5, 0.5, n_patches)
    cy = jnp.linspace(-0.4, 0.4, n_patches)
    ly = jnp.linspace(-0.35, 0.35, hp)
    lx = jnp.linspace(-0.35, 0.35, wp)
    gy, gx = jnp.meshgrid(ly, lx, indexing="ij")              # (hp, wp)
    base = jnp.stack([gx, gy], axis=-1)                       # (hp, wp, 2)
    centers = jnp.stack([cx, cy], axis=-1)                    # (n, 2)
    patches = base[None, :, :, :] + centers[:, None, None, :]
    jitter = 0.02 * jax.random.normal(key, patches.shape)
    return (patches + jitter).astype(jnp.float32)


def ref_grid_sample(x, patches):
    """Pure-JAX reference of the forward (bilinear, align_corners=True, zero pad)."""
    B, C, H, W = x.shape
    gx = (patches[..., 0] + 1.0) * 0.5 * (W - 1)
    gy = (patches[..., 1] + 1.0) * 0.5 * (H - 1)
    ix0 = jnp.floor(gx)
    iy0 = jnp.floor(gy)
    ix1 = ix0 + 1.0
    iy1 = iy0 + 1.0
    wx1 = gx - ix0
    wx0 = 1.0 - wx1
    wy1 = gy - iy0
    wy0 = 1.0 - wy1

    def tap(iy, ix, w):
        valid = ((ix >= 0) & (ix <= W - 1) & (iy >= 0) & (iy <= H - 1)).astype(x.dtype)
        ixc = jnp.clip(ix, 0, W - 1).astype(jnp.int32)
        iyc = jnp.clip(iy, 0, H - 1).astype(jnp.int32)
        vals = x[:, :, iyc, ixc]                               # (B, C, N, Hp, Wp)
        return vals * (w * valid)[None, None]

    out = (tap(iy0, ix0, wx0 * wy0) + tap(iy0, ix1, wx1 * wy0) +
           tap(iy1, ix0, wx0 * wy1) + tap(iy1, ix1, wx1 * wy1))
    return jnp.transpose(out, (0, 2, 1, 3, 4))                 # (B, N, C, Hp, Wp)


if __name__ == "__main__":
    key = jax.random.PRNGKey(0)
    k_x, k_p = jax.random.split(key)

    B, C, H, W = 2, 8, 16, 16
    N_patches, Hp, Wp = 4, 8, 8

    x = jax.random.normal(k_x, (B, C, H, W), dtype=jnp.float32)
    patches_2d = make_synthetic_patches(k_p, N_patches, Hp, Wp)   # (N, Hp, Wp, 2)

    # p_tile/hw_tile = 128 -> (2, 2) grid: exercises the parallel P axis, the HW
    # reduction accumulator, and the activity/fetch tile-skip path at demo sizes.
    out = undistort_patch_forward(x, patches_2d, p_tile=128, hw_tile=128)
    jax.block_until_ready(out)

    assert out.shape == (B, N_patches, C, Hp, Wp), out.shape
    ref = ref_grid_sample(x, patches_2d)
    np.testing.assert_allclose(np.asarray(out), np.asarray(ref), atol=1e-4, rtol=1e-4)

    # Also exercise the default (padding / tile-pick) path once.
    out2 = undistort_patch_forward(x, patches_2d)
    jax.block_until_ready(out2)
    np.testing.assert_allclose(np.asarray(out2), np.asarray(ref), atol=1e-4, rtol=1e-4)

    print("KERNEL_OK")
</pallas_src>

<mosaic_0001>
module attributes {stable_mosaic.version = 11 : i64} {
  func.func @undistort_patch_kernel(%arg0: i32, %arg1: i32, %arg2: memref<4xi32, #tpu.memory_space<smem>>, %arg3: memref<4xi32, #tpu.memory_space<smem>>, %arg4: memref<1x128xi32, #tpu.memory_space<vmem>>, %arg5: memref<4x128xf32, #tpu.memory_space<vmem>>, %arg6: memref<16x128xf32, #tpu.memory_space<vmem>>, %arg7: memref<16x128xf32, #tpu.memory_space<vmem>>, %arg8: memref<16x128xf32, #tpu.memory_space<vmem>>, %arg9: memref<128x128xi32, #tpu.memory_space<vmem>>) attributes {dimension_semantics = [#tpu.dimension_semantics<parallel>, #tpu.dimension_semantics<arbitrary>], iteration_bounds = array<i64: 2, 2>, scalar_prefetch = 2 : i64, scratch_operands = 2 : i64, tpu.core_type = #tpu.core_type<tc>, window_params = [{transform_indices = @transform_0, window_bounds = array<i64: 1, 128>}, {transform_indices = @transform_1, window_bounds = array<i64: 4, 128>}, {transform_indices = @transform_2, window_bounds = array<i64: 16, 128>}, {transform_indices = @transform_3, window_bounds = array<i64: 16, 128>}]} {
    %c1_i32 = arith.constant 1 : i32
    %0 = arith.cmpi eq, %arg1, %c1_i32 : i32
    %c0_i32 = arith.constant 0 : i32
    %1 = arith.cmpi eq, %arg1, %c0_i32 : i32
    %2 = arith.extui %1 : i1 to i32
    %c0_i32_0 = arith.constant 0 : i32
    %3 = arith.cmpi ne, %2, %c0_i32_0 : i32
    scf.if %3 {
      %15 = tpu.iota {dimensions = array<i32: 0>} : vector<128x128xi32>
      %c0 = arith.constant 0 : index
      %c0_5 = arith.constant 0 : index
      %16 = vector.load %arg9[%c0, %c0_5] : memref<128x128xi32, #tpu.memory_space<vmem>>, vector<128x128xi32>
      tpu.vector_store %arg9[%c0, %c0_5], %15 {strides = array<i32>} : memref<128x128xi32, #tpu.memory_space<vmem>>, vector<128x128xi32>,
      %cst = arith.constant 0.000000e+00 : f32
      %17 = vector.broadcast %cst : f32 to vector<16x128xf32>
      %c0_6 = arith.constant 0 : index
      %c0_7 = arith.constant 0 : index
      %18 = vector.load %arg8[%c0_6, %c0_7] : memref<16x128xf32, #tpu.memory_space<vmem>>, vector<16x128xf32>
      tpu.vector_store %arg8[%c0_6, %c0_7], %17 {strides = array<i32>} : memref<16x128xf32, #tpu.memory_space<vmem>>, vector<16x128xf32>,
    } else {
    }
    %c2_i32 = arith.constant 2 : i32
    %4 = arith.muli %arg0, %c2_i32 : i32
    %5 = arith.addi %4, %arg1 : i32
    %6 = arith.index_cast %5 : i32 to index
    %7 = memref.load %arg2[%6] : memref<4xi32, #tpu.memory_space<smem>>
    %c0_i32_1 = arith.constant 0 : i32
    %8 = arith.cmpi ne, %7, %c0_i32_1 : i32
    %9 = arith.extui %8 : i1 to i32
    %c0_i32_2 = arith.constant 0 : i32
    %10 = arith.cmpi ne, %9, %c0_i32_2 : i32
    scf.if %10 {
      %c0 = arith.constant 0 : index
      %c0_5 = arith.constant 0 : index
      %15 = vector.load %arg4[%c0, %c0_5] : memref<1x128xi32, #tpu.memory_space<vmem>>, vector<1x128xi32>
      %c128_i32 = arith.constant 128 : i32
      %16 = arith.muli %arg1, %c128_i32 : i32
      %17 = vector.broadcast %16 : i32 to vector<1x128xi32>
      %18 = arith.subi %15, %17 : vector<1x128xi32>
      %c0_6 = arith.constant 0 : index
      %c0_7 = arith.constant 0 : index
      %19 = vector.load %arg9[%c0_6, %c0_7] : memref<128x128xi32, #tpu.memory_space<vmem>>, vector<128x128xi32>
      %20 = vector.broadcast %18 : vector<1x128xi32> to vector<128x128xi32>
      %21 = arith.subi %19, %20 : vector<128x128xi32>
      %c0_i32_8 = arith.constant 0 : i32
      %22 = vector.broadcast %c0_i32_8 : i32 to vector<128x128xi32>
      %23 = arith.cmpi eq, %21, %22 : vector<128x128xi32>
      %c0_9 = arith.constant 0 : index
      %c0_10 = arith.constant 0 : index
      %24 = vector.load %arg5[%c0_9, %c0_10] : memref<4x128xf32, #tpu.memory_space<vmem>>, vector<1x128xf32>
      %cst = arith.constant 0.000000e+00 : f32
      %25 = vector.shape_cast %24 : vector<1x128xf32> to vector<1x128xf32>
      %26 = vector.broadcast %25 : vector<1x128xf32> to vector<128x128xf32>
      %27 = vector.broadcast %cst : f32 to vector<128x128xf32>
      %28 = arith.select %23, %26, %27 : vector<128x128xi1>, vector<128x128xf32>
      %c1_i32_11 = arith.constant 1 : i32
      %29 = vector.broadcast %c1_i32_11 : i32 to vector<128x128xi32>
      %30 = arith.cmpi eq, %21, %29 : vector<128x128xi32>
      %c1 = arith.constant 1 : index
      %c0_12 = arith.constant 0 : index
      %31 = vector.load %arg5[%c1, %c0_12] : memref<4x128xf32, #tpu.memory_space<vmem>>, vector<1x128xf32>
      %cst_13 = arith.constant 0.000000e+00 : f32
      %32 = vector.shape_cast %31 : vector<1x128xf32> to vector<1x128xf32>
      %33 = vector.broadcast %32 : vector<1x128xf32> to vector<128x128xf32>
      %34 = vector.broadcast %cst_13 : f32 to vector<128x128xf32>
      %35 = arith.select %30, %33, %34 : vector<128x128xi1>, vector<128x128xf32>
      %36 = arith.addf %28, %35 : vector<128x128xf32>
      %c16_i32 = arith.constant 16 : i32
      %37 = vector.broadcast %c16_i32 : i32 to vector<128x128xi32>
      %38 = arith.cmpi eq, %21, %37 : vector<128x128xi32>
      %c2 = arith.constant 2 : index
      %c0_14 = arith.constant 0 : index
      %39 = vector.load %arg5[%c2, %c0_14] : memref<4x128xf32, #tpu.memory_space<vmem>>, vector<1x128xf32>
      %cst_15 = arith.constant 0.000000e+00 : f32
      %40 = vector.shape_cast %39 : vector<1x128xf32> to vector<1x128xf32>
      %41 = vector.broadcast %40 : vector<1x128xf32> to vector<128x128xf32>
      %42 = vector.broadcast %cst_15 : f32 to vector<128x128xf32>
      %43 = arith.select %38, %41, %42 : vector<128x128xi1>, vector<128x128xf32>
      %44 = arith.addf %36, %43 : vector<128x128xf32>
      %c17_i32 = arith.constant 17 : i32
      %45 = vector.broadcast %c17_i32 : i32 to vector<128x128xi32>
      %46 = arith.cmpi eq, %21, %45 : vector<128x128xi32>
      %c3 = arith.constant 3 : index
      %c0_16 = arith.constant 0 : index
      %47 = vector.load %arg5[%c3, %c0_16] : memref<4x128xf32, #tpu.memory_space<vmem>>, vector<1x128xf32>
      %cst_17 = arith.constant 0.000000e+00 : f32
      %48 = vector.shape_cast %47 : vector<1x128xf32> to vector<1x128xf32>
      %49 = vector.broadcast %48 : vector<1x128xf32> to vector<128x128xf32>
      %50 = vector.broadcast %cst_17 : f32 to vector<128x128xf32>
      %51 = arith.select %46, %49, %50 : vector<128x128xi1>, vector<128x128xf32>
      %52 = arith.addf %44, %51 : vector<128x128xf32>
      %c0_18 = arith.constant 0 : index
      %c0_19 = arith.constant 0 : index
      %53 = vector.load %arg8[%c0_18, %c0_19] : memref<16x128xf32, #tpu.memory_space<vmem>>, vector<16x128xf32>
      %c0_20 = arith.constant 0 : index
      %c0_21 = arith.constant 0 : index
      %54 = vector.load %arg6[%c0_20, %c0_21] : memref<16x128xf32, #tpu.memory_space<vmem>>, vector<16x128xf32>
      %cst_22 = arith.constant dense<0.000000e+00> : vector<16x128xf32>
      %55 = tpu.matmul %54, %52, %cst_22 {dimension_numbers = #tpu.dot_dimension_numbers<[1], [0], [0], [1], [0, 0, 1, 1], [], []>} : vector<16x128xf32>, vector<128x128xf32>, vector<16x128xf32> -> vector<16x128xf32>
      %56 = arith.addf %53, %55 : vector<16x128xf32>
      %57 = arith.extui %0 : i1 to i32
      %c0_i32_23 = arith.constant 0 : i32
      %58 = arith.cmpi ne, %57, %c0_i32_23 : i32
      scf.if %58 {
        %c0_25 = arith.constant 0 : index
        %c0_26 = arith.constant 0 : index
        %62 = vector.load %arg7[%c0_25, %c0_26] : memref<16x128xf32, #tpu.memory_space<vmem>>, vector<16x128xf32>
        tpu.vector_store %arg7[%c0_25, %c0_26], %56 {strides = array<i32>} : memref<16x128xf32, #tpu.memory_space<vmem>>, vector<16x128xf32>,
      } else {
      }
      %true = arith.constant true
      %59 = arith.xori %0, %true : i1
      %60 = arith.extui %59 : i1 to i32
      %c0_i32_24 = arith.constant 0 : i32
      %61 = arith.cmpi ne, %60, %c0_i32_24 : i32
      scf.if %61 {
        %c0_25 = arith.constant 0 : index
        %c0_26 = arith.constant 0 : index
        %62 = vector.load %arg8[%c0_25, %c0_26] : memref<16x128xf32, #tpu.memory_space<vmem>>, vector<16x128xf32>
        tpu.vector_store %arg8[%c0_25, %c0_26], %56 {strides = array<i32>} : memref<16x128xf32, #tpu.memory_space<vmem>>, vector<16x128xf32>,
      } else {
      }
    } else {
    }
    %c0_i32_3 = arith.constant 0 : i32
    %11 = arith.cmpi eq, %7, %c0_i32_3 : i32
    %12 = arith.andi %11, %0 : i1
    %13 = arith.extui %12 : i1 to i32
    %c0_i32_4 = arith.constant 0 : i32
    %14 = arith.cmpi ne, %13, %c0_i32_4 : i32
    scf.if %14 {
      %c0 = arith.constant 0 : index
      %c0_5 = arith.constant 0 : index
      %15 = vector.load %arg8[%c0, %c0_5] : memref<16x128xf32, #tpu.memory_space<vmem>>, vector<16x128xf32>
      %c0_6 = arith.constant 0 : index
      %c0_7 = arith.constant 0 : index
      %16 = vector.load %arg7[%c0_6, %c0_7] : memref<16x128xf32, #tpu.memory_space<vmem>>, vector<16x128xf32>
      tpu.vector_store %arg7[%c0_6, %c0_7], %15 {strides = array<i32>} : memref<16x128xf32, #tpu.memory_space<vmem>>, vector<16x128xf32>,
    } else {
    }
    return
  }
  func.func @transform_0(%arg0: i32, %arg1: i32, %arg2: memref<4xi32, #tpu.memory_space<smem>>, %arg3: memref<4xi32, #tpu.memory_space<smem>>) -> (i32, i32) {
    %c0_i32 = arith.constant 0 : i32
    %c0_i32_0 = arith.constant 0 : i32
    return %c0_i32, %arg0 : i32, i32
  }
  func.func @transform_1(%arg0: i32, %arg1: i32, %arg2: memref<4xi32, #tpu.memory_space<smem>>, %arg3: memref<4xi32, #tpu.memory_space<smem>>) -> (i32, i32) {
    %c0_i32 = arith.constant 0 : i32
    %c0_i32_0 = arith.constant 0 : i32
    return %c0_i32, %arg0 : i32, i32
  }
  func.func @transform_2(%arg0: i32, %arg1: i32, %arg2: memref<4xi32, #tpu.memory_space<smem>>, %arg3: memref<4xi32, #tpu.memory_space<smem>>) -> (i32, i32) {
    %c2_i32 = arith.constant 2 : i32
    %0 = arith.muli %arg0, %c2_i32 : i32
    %1 = arith.addi %0, %arg1 : i32
    %2 = arith.index_cast %1 : i32 to index
    %3 = memref.load %arg3[%2] : memref<4xi32, #tpu.memory_space<smem>>
    %c0_i32 = arith.constant 0 : i32
    %c0_i32_0 = arith.constant 0 : i32
    return %c0_i32, %3 : i32, i32
  }
  func.func @transform_3(%arg0: i32, %arg1: i32, %arg2: memref<4xi32, #tpu.memory_space<smem>>, %arg3: memref<4xi32, #tpu.memory_space<smem>>) -> (i32, i32) {
    %c0_i32 = arith.constant 0 : i32
    %c0_i32_0 = arith.constant 0 : i32
    return %c0_i32, %arg0 : i32, i32
  }
}

</mosaic_0001>

<bundles_post_ra>
// kernel: tpu_custom_call.1
= control target key start
LH: loop header
LB: loop body
LE: loop exit
PB: predicated region body
PF: predicated region fallthrough
CT: control target
= control target key end

     0   :  { %s1624_s0 = inlined_call_operand.hbm [shape: s32[4], index: 0, kind: input, shape index: {}]   ;;  %s1625_s2 = inlined_call_operand.vmem [shape: s32[1,256], index: 2, kind: input, shape index: {}]   ;;  %s1626_s3 = inlined_call_operand.vmem [shape: f32[4,256], index: 3, kind: input, shape index: {}]   ;;  %s1627_s4 = inlined_call_operand.hbm [shape: f32[16,256], index: 4, kind: input, shape index: {}]   ;;  %s1628_s5 = inlined_call_operand.hbm [shape: f32[16,256], index: 5, kind: output, shape index: {}]   ;;  %s1629_s1 = inlined_call_operand.vmem [shape: s32[4], index: 1, kind: input, shape index: {}]  }
   0x1   :  { %s982_s20 = scalar_lea.hbm %s1624_s0, 16 }
   0x2   :  { %p983_p0 = scmp.ne.s32.totalorder %s1624_s0, %s982_s20  ;;  %p986_p1 = scmp.lt.u32.totalorder %s982_s20, %s1624_s0 }
   0x4   :  { %p988_p2 = pnand %p986_p1, %p983_p0 }
   0x6   :  { %991 = shalt.err (!%p988_p2)  }
   0x7   :  { %s1160_s25 = smov [#allocation5]   ;;  %s12_s30 = sshll.u32 %s1629_s1, 4  ;;  %s13_s30 = int_to_ptr.vmem [resolvable:$true] %s12_s30 }
   0x8   :  { %11 = dma.hbm_to_smem %s1624_s0, 16, %s1160_s25, [#allocation4] }
   0x9   :  { %s992_s6 = scalar_lea.vmem %s13_s30, 16  ;;  %p997_p4 = scmp.lt.s32.totalorder %s13_s30, %s13_s30 }
   0xa   :  { %p993_p3 = scmp.ne.s32.totalorder %s13_s30, %s992_s6  ;;  %p998_p5 = scmp.lt.s32.totalorder %s992_s6, %s992_s6 }
   0xc   :  { %p999_p6 = por %p998_p5, %p997_p4 }
   0xe   :  { %p1000_p7 = pnand %p999_p6, %p993_p3 }
  0x10   :  { %1003 = shalt.err (!%p1000_p7)  }
  0x11   :  { %s1161_s7 = smov [#allocation6]  }
  0x12   :  { %15 = dma.vmem_to_smem %s13_s30, 16, %s1161_s7, [#allocation4] }
  0x13   :  { %1106 = dma.done.wait [#allocation4], 32 }
  0x14   :  { %1107 = vsyncadd [#allocation4], 4294967264 }
  0x15   :  { %17 = sfence }
  0x16   :  { %18 = vsyncpa [#allocation8], 0 }
  0x17   :  { %20 = vsyncpa [#allocation8 + $0x1], 0 }
  0x18   :  { %21 = vsyncpa [#allocation9], 0 }
  0x19   :  { %23 = vsyncpa [#allocation9 + $0x1], 0  ;;  %s1216_s0 = smov 0   ;;  %s1218_s1 = smov 0  }
  0x1a   :  { %s1220_s8 = smov 0   ;;  %s1222_s9 = smov 0  }
  0x1b   :  { %s1224_s10 = smov 0   ;;  %s1226_s11 = smov 0  }
  0x1c   :  { %s1228_s12 = smov 0   ;;  %s1230_s13 = smov 0  }
  0x1d   :  { %s1232_s14 = smov 0   ;;  %s1234_s15 = smov 0  }
  0x1e   :  { %s1236_s16 = smov 0  }
  0x1f LB: > { %1635 = sst [smem:[#allocation16_spill]] %s1154_s15  ;;  %s755_s17 = sadd.s32 4294967295, %s1158_s16   ;;  %s1158_s16 = sphi %s1236_s16, %s29_s16   ;;  %s1154_s15 = sphi %s1234_s15, %s1649_s15   ;;  %s1150_s14 = sphi %s1232_s14, %s1657_s14   ;;  %s1146_s13 = sphi %s1230_s13, %s1647_s13   ;;  %s1142_s12 = sphi %s1228_s12, %s1656_s12   ;;  %s1138_s11 = sphi %s1226_s11, %s1655_s11   ;;  %s1134_s10 = sphi %s1224_s10, %s1654_s10   ;;  %s1130_s9 = sphi %s1222_s9, %s1653_s9   ;;  %s1126_s8 = sphi %s1220_s8, %s1652_s8   ;;  %s1122_s1 = sphi %s1218_s1, %s1651_s1   ;;  %s1118_s0 = sphi %s1216_s0, %s1650_s0  }
  0x20   : > { %s756_s18 = sadd.s32 4294967294, %s1158_s16   ;;  %s38_s19 = sadd.s32 1, %s1150_s14 }
  0x21   : > { %s41_s20 = sadd.s32 1, %s1154_s15  ;;  %p39_p8 = scmp.ge.s32.totalorder %s38_s19, 2 }
  0x22   : > { %s757_s21 = sshll.u32 %s1154_s15, 1  ;;  %s106_s23 = sadd.s32 1, %s1138_s11 }
  0x23   : > { %s1275_s22 = sadd.s32 %s1150_s14, %s757_s21  ;;  %s1659_s19 = smov (%p39_p8, %s38_s19), 0 }
  0x24   : > { %1636 = sst [smem:[#allocation17_spill]] %s1659_s19  ;;  %s1661_s20 = smov (!%p39_p8, %s41_s20), %s1154_s15 }
  0x25   : > { %s99_s24 = sld [smem:[#allocation6 + %s1275_s22]]  ;;  %p113_p9 = scmp.ne.s32.totalorder %s1138_s11, %s1134_s10 }
  0x26   : > { %p43_p10 = scmp.ge.s32.totalorder %s1661_s20, 2  ;;  %p114_p11 = scmp.eq.s32.totalorder %s1158_s16, 0 }
  0x27   : > { %p119_p12 = scmp.ne.s32.totalorder %s1134_s10, %s1130_s9  ;;  %p120_p13 = scmp.eq.s32.totalorder %s755_s17, 0 }
  0x28   : > { %s1663_s20 = smov (%p43_p10, %s1661_s20), 0  ;;  %p1288_p0 = por %p114_p11, %p113_p9 }
  0x29   : > { %1637 = sst [smem:[#allocation18_spill]] %s1663_s20  ;;  %p1292_p1 = por %p120_p13, %p119_p12 }
  0x2a   : > { %s758_s27 = sshll.u32 %s1663_s20, 1  ;;  %s129_s28 = ssub.s32 %s1154_s15, %s1663_s20 }
  0x2b   : > { %s1639_s26 = scalar_select %p1292_p1, 1, 0 }
  0x2c   : > { %s101_s29 = sadd.s32 %s758_s27, %s1659_s19  ;;  %p130_p2 = scmp.eq.s32.totalorder %s129_s28, 0 }
  0x2d   : > { %s102_s30 = sld [smem:[#allocation6 + %s101_s29]]  ;;  %s132_s6 = sadd.s32 1, %s1126_s8 }
  0x2e   : > { %s1302_s7 = scalar_select %p130_p2, %s1126_s8, %s132_s6  }
  0x2f   : > { %p142_p3 = scmp.ne.s32.totalorder %s1126_s8, %s1122_s1  ;;  %p143_p4 = scmp.eq.s32.totalorder %s755_s17, 3 }
  0x30   : > { %p148_p5 = scmp.ne.s32.totalorder %s1122_s1, %s1118_s0  ;;  %p149_p6 = scmp.eq.s32.totalorder %s756_s18, 3 }
  0x31   : > { %p1308_p7 = por %p143_p4, %p142_p3  ;;  %p883_p9 = scmp.lt.s32.totalorder %s1158_s16, 4 }
  0x32   : > { %p1312_p8 = por %p149_p6, %p148_p5  ;;  %s182_s28 = sand.u32 1, %s1138_s11  }
  0x33   : > { %s1640_s9 = scalar_select %p1308_p7, 1, 0 }
  0x34   : > { %s1641_s21 = scalar_select %p1312_p8, 1, 0 }
  0x35   : > { %s103_s27 = ssub.s32 %s99_s24, %s102_s30  ;;  %s761_s29 = sshll.u32 %s182_s28, 4 }
  0x36   : > { %p104_p10 = scmp.eq.s32.totalorder %s103_s27, 0  ;;  %p1320_p11 = pnand %p883_p9, %p1288_p0 }
  0x37   : > { %s867_s6 = scalar_select %p1288_p0, [#allocation6], [#allocation11] }
  0x38   : > { %s1327_s18 = scalar_select %p104_p10, %s1138_s11, %s106_s23  }
  0x39   : > { %s1665_s22 = smov (!%p1288_p0, %s1275_s22), 0  ;;  %s1667_s6 = smov (!%p883_p9, %s867_s6), [#allocation12] }
  0x3a   : > { %s1669_s22 = smov (!%p883_p9, %s1665_s22), 0  ;;  %s186_s30 = scalar_lea.vmem [#allocation7], %s761_s29 }
  0x3b   : > { %s189_s24 = sld [smem:[%s1667_s6 + %s1669_s22]]  ;;  %s195_s27 = sshll.u32 %s186_s30, 4  ;;  %s1336_s27 = int_to_ptr.vmem [resolvable:$true] %s195_s27 }
  0x3c   : > { %p764_p12 = scmp.ge.s32.totalorder %s1158_s16, 1  ;;  %p203_p13 = scmp.lt.s32.totalorder %s1158_s16, 5 }
  0x3d   : > { %s1347_s22 = scalar_lea.sflag [#allocation8], %s182_s28  ;;  %p1006_p3 = pneg %p1320_p11 }
  0x3e   : > { %p1338_p2 = pnand %p764_p12, %p203_p13  ;;  %s1009_s15 = scalar_lea.hbm %s1627_s4, 512 }
  0x41   : > { %s763_s23 = sshll.u32 %s189_s24, 7 }
  0x42   : > { %s1345_s25 = scalar_lea.hbm %s1627_s4, %s763_s23 }
  0x43   : > { %s1004_s29 = scalar_lea.hbm %s1345_s25, 256  ;;  %p1010_p6 = scmp.lt.u32.totalorder %s1345_s25, %s1627_s4 }
  0x44   : > { %p1005_p0 = scmp.ne.s32.totalorder %s1345_s25, %s1004_s29  ;;  %p1011_p9 = scmp.lt.u32.totalorder %s1009_s15, %s1004_s29 }
  0x45   : > { %p1013_p12 = scmp.lt.u32.totalorder %s1004_s29, %s1345_s25 }
  0x46   : > { %p1007_p4 = pnand %p1006_p3, %p1005_p0  ;;  %p1012_p10 = por %p1011_p9, %p1010_p6 }
  0x48   : > { %p1008_p5 = pneg %p1007_p4  ;;  %p1014_p13 = por %p1013_p12, %p1012_p10 }
  0x4a   : > { %p1015_p8 = pnand %p1014_p13, %p1008_p5 }
  0x4c   : > { %1018 = shalt.err (!%p1015_p8)
}
  0x4d   : > { %s1019_s28 = scalar_lea.vmem %s1336_s27, 256  ;;  %s1162_s23 = smov [#allocation7]  }
  0x4e   : > { %p1020_p0 = scmp.ne.s32.totalorder %s1336_s27, %s1019_s28  ;;  %s1024_s6 = sshll.u32 %s1162_s23, 4  ;;  %s1025_s6 = int_to_ptr.vmem [resolvable:$false] %s1024_s6 }
  0x4f   : > { %s1026_s24 = scalar_lea.vmem %s1025_s6, 512  ;;  %p1027_p1 = scmp.lt.s32.totalorder %s1336_s27, %s1025_s6 }
  0x50   : > { %p1022_p4 = pnand %p1020_p0, %p1006_p3  ;;  %p1028_p6 = scmp.lt.s32.totalorder %s1026_s24, %s1019_s28 }
  0x52   : > { %p1023_p7 = pneg %p1022_p4  ;;  %p1029_p9 = por %p1028_p6, %p1027_p1 }
  0x54   : > { %p1030_p10 = pnand %p1029_p9, %p1023_p7 }
  0x56   : > { %1033 = shalt.err (!%p1030_p10)
}
  0x57   : > { %s1163_s29 = smov 256   ;;  %s1164_s15 = smov 128  }
  0x58   : > { %s1165_s19 = smov 8   ;;  %207 = sbr.rel (%p1338_p2) target bundleno = 449 (0x1c1), region = 32 }
  0x59   : > { %878 = dma.hbm_to_vmem [thread:$0]  (!%p1320_p11), %s1345_s25, 256, %s1336_s27, %s1347_s22, %s1163_s29, %s1164_s15, %s1165_s19  }
  0x5a   : > { %s209_s30 = sand.u32 (!%p1338_p2), 1, %s1134_s10   ;;  %p1644_p1 = scmp.ne.s32.totalorder (!%p1338_p2), %s1639_s26, 0 }
  0x5b   : > { %s1378_s23 = sshll.u32 (!%p1338_p2), %s209_s30, 4  ;;  %s210_s28 = scalar_lea.sflag (!%p1338_p2), [#allocation8], %s209_s30 }
  0x5c   : > { %s213_s6 = scalar_lea.vmem (!%p1338_p2), [#allocation7], %s1378_s23 }
  0x5f   : > { %1109 = dma.done.wait (%p1644_p1), %s210_s28, 256  }
  0x60   : > { %1111 = vsyncadd (%p1644_p1), %s210_s28, 4294967040  ;;  %s240_s20 = sand.u32 1, %s1122_s1   ;;  %p243_p7 = scmp.lt.s32.totalorder %s1146_s13, 1 }
  0x61   : > { %s766_s17 = sshll.u32 %s240_s20, 4  ;;  %p253_p8 = scmp.eq.s32.totalorder %s1142_s12, 1 }
  0x62   : > { %s1391_s27 = scalar_select %p243_p7, %s1146_s13, 1 }
  0x63   : > { %s1403_s30 = scalar_lea.vmem [#allocation10], %s766_s17  ;;  %p768_p11 = scmp.ne.s32.totalorder %s1142_s12, 0 }
  0x64   : > { %s245_s24 = scalar_lea.vmem %s1625_s2, %s1391_s27  ;;  %s767_s26 = sshll.u32 %s1391_s27, 2  ;;  %v258_v0 = vlaneseq (!%p768_p11)  ;;  %v1166_v1 = vmov (!%p768_p11), 0.0  }
  0x65   : > { %s1401_s19 = scalar_lea.vmem %s1626_s3, %s767_s26  ;;  %257 = sbr.rel (%p768_p11) target bundleno = 114 (0x72), region = 40  ;;  %291 = vst [vmem:[#allocation2] sm:$0xff] (!%p768_p11), %v1166_v1  ;;  %292 = vst [vmem:[#allocation2 + $0x8] sm:$0xff] (!%p768_p11), %v1166_v1 }
  0x66   : > { %v259_v2 = vshrl.u32 (!%p768_p11), %v258_v0, 7 }
  0x68   : > { %275 = vst [vmem:[#allocation3] sm:$0xff] (!%p768_p11), %v259_v2  ;;  %v260_v3 = vadd.s32 (!%p768_p11), 8, %v259_v2  ;;  %v261_v4 = vadd.s32 (!%p768_p11), 16, %v259_v2  ;;  %v262_v5 = vadd.s32 (!%p768_p11), 24, %v259_v2  ;;  %v263_v6 = vadd.s32 (!%p768_p11), 32, %v259_v2 }
  0x69   : > { %v264_v7 = vadd.s32 (!%p768_p11), 40, %v259_v2  ;;  %v265_v8 = vadd.s32 (!%p768_p11), 48, %v259_v2  ;;  %v266_v9 = vadd.s32 (!%p768_p11), 56, %v259_v2  ;;  %v267_v10 = vadd.s32 (!%p768_p11), 64, %v259_v2 }
  0x6a   : > { %276 = vst [vmem:[#allocation3 + $0x8] sm:$0xff] (!%p768_p11), %v260_v3  ;;  %277 = vst [vmem:[#allocation3 + $0x10] sm:$0xff] (!%p768_p11), %v261_v4  ;;  %v268_v11 = vadd.s32 (!%p768_p11), 72, %v259_v2  ;;  %v269_v12 = vadd.s32 (!%p768_p11), 80, %v259_v2  ;;  %v270_v13 = vadd.s32 (!%p768_p11), 88, %v259_v2  ;;  %v271_v14 = vadd.s32 (!%p768_p11), 96, %v259_v2 }
  0x6b   : > { %278 = vst [vmem:[#allocation3 + $0x18] sm:$0xff] (!%p768_p11), %v262_v5  ;;  %279 = vst [vmem:[#allocation3 + $0x20] sm:$0xff] (!%p768_p11), %v263_v6  ;;  %v272_v15 = vadd.s32 (!%p768_p11), 104, %v259_v2  ;;  %v273_v16 = vadd.s32 (!%p768_p11), 112, %v259_v2  ;;  %v274_v17 = vadd.s32 (!%p768_p11), 120, %v259_v2 }
  0x6c   : > { %280 = vst [vmem:[#allocation3 + $0x28] sm:$0xff] %v264_v7  ;;  %281 = vst [vmem:[#allocation3 + $0x30] sm:$0xff] %v265_v8 }
  0x6d   : > { %282 = vst [vmem:[#allocation3 + $0x38] sm:$0xff] %v266_v9  ;;  %283 = vst [vmem:[#allocation3 + $0x40] sm:$0xff] %v267_v10 }
  0x6e   : > { %284 = vst [vmem:[#allocation3 + $0x48] sm:$0xff] %v268_v11  ;;  %285 = vst [vmem:[#allocation3 + $0x50] sm:$0xff] %v269_v12 }
  0x6f   : > { %286 = vst [vmem:[#allocation3 + $0x58] sm:$0xff] %v270_v13  ;;  %287 = vst [vmem:[#allocation3 + $0x60] sm:$0xff] %v271_v14 }
  0x70   : > { %288 = vst [vmem:[#allocation3 + $0x68] sm:$0xff] %v272_v15  ;;  %289 = vst [vmem:[#allocation3 + $0x70] sm:$0xff] %v273_v16 }
  0x71   : > { %290 = vst [vmem:[#allocation3 + $0x78] sm:$0xff] %v274_v17 }
  0x72 PF: > { %s769_s28 = sshll.u32 %s1146_s13, 1 }
  0x73   : > { %s294_s17 = sadd.s32 %s1142_s12, %s769_s28 }
  0x74   : > { %s1408_s25 = sld [smem:[#allocation5 + %s294_s17]] }
  0x7a   : > { %p770_p2 = scmp.eq.s32.totalorder %s1408_s25, 0 }
  0x7b   : > { %v300_v18 = vld [vmem:[%s245_s24] sm:$0x1] (!%p770_p2)  ;;  %s771_s29 = sshll.u32 (!%p770_p2), %s1142_s12, 7  ;;  %v320_v19 = vlaneseq (!%p770_p2)  ;;  %v305_v24 = vld [vmem:[#allocation3 + $0x8] sm:$0xff] (!%p770_p2)  ;;  %v306_v26 = vld [vmem:[#allocation3 + $0x10] sm:$0xff] (!%p770_p2)  ;;  %p776_p3 = scmp.ne.s32.totalorder (!%p770_p2), %s1142_s12, 1 }
  0x7c   : > { %299 = sbr.rel (%p770_p2) target bundleno = 413 (0x19d), region = 44  ;;  %v302_v20 = vstv (!%p770_p2), %s771_s29  ;;  %v304_v23 = vld [vmem:[#allocation3] sm:$0xff] (!%p770_p2)  ;;  %v307_v27 = vld [vmem:[#allocation3 + $0x18] sm:$0xff] (!%p770_p2)  ;;  %v309_v30 = vld [vmem:[#allocation3 + $0x28] sm:$0xff] (!%p770_p2) }
  0x7d   : > { %v303_v21 = vsub.s32 (!%p770_p2), %v300_v18, %v302_v20  ;;  %v321_v22 = vshrl.u32 (!%p770_p2), %v320_v19, 7  ;;  %v308_v28 = vld [vmem:[#allocation3 + $0x20] sm:$0xff] (!%p770_p2)  ;;  %v310_v31 = vld [vmem:[#allocation3 + $0x30] sm:$0xff] (!%p770_p2)  ;;  %v311_v32 = vld [vmem:[#allocation3 + $0x38] sm:$0xff] (!%p770_p2) }
  0x7e   : > { %v538_v33 = vld [vmem:[%s213_s6] sm:$0xff] (!%p770_p2) }
  0x7f   : > { %v322_v25 = vsub.s32 (!%p770_p2), 0, %v321_v22  ;;  %v1426_v36 = vld [vmem:[%s1401_s19] ss:$0 sm:$0xff] (!%p770_p2)  ;;  %v1429_v37 = vld [vmem:[%s1401_s19 + $0x1] ss:$0 sm:$0xff] (!%p770_p2)  ;;  %832 = vmatprep.mubr.f32.mxu0 (!%p770_p2), %v538_v33 }
  0x80   : > { %v1446_v44 = vld [vmem:[%s1401_s19 + $0x2] ss:$0 sm:$0xff] (!%p770_p2)  ;;  %v1453_v49 = vld [vmem:[%s1401_s19 + $0x3] ss:$0 sm:$0xff] (!%p770_p2) }
  0x81   : > { %v1419_v29 = vrot.slane (!%p770_p2), %v303_v21, %v322_v25 }
  0x83   : > { %v324_v34 = vsub.s32 %v304_v23, %v1419_v29  ;;  %v325_v35 = vsub.s32 %v305_v24, %v1419_v29  ;;  %v326_v38 = vsub.s32 %v306_v26, %v1419_v29  ;;  %v327_v39 = vsub.s32 %v307_v27, %v1419_v29 }
  0x84   : > { %v1434_v40 = vsub.s32 %v308_v28, %v1419_v29  ;;  %v1437_v41 = vsub.s32 %v309_v30, %v1419_v29  ;;  %v1440_v42 = vsub.s32 %v310_v31, %v1419_v29  ;;  %v1443_v43 = vsub.s32 %v311_v32, %v1419_v29  ;;  %v312_v30 = vld [vmem:[#allocation3 + $0x40] sm:$0xff] }
  0x85   : > { %vm340_vm0 = vcmp.eq.s32.totalorder %v324_v34, 0  ;;  %vm341_vm1 = vcmp.eq.s32.totalorder %v325_v35, 0  ;;  %vm377_vm2 = vcmp.eq.s32.totalorder %v324_v34, 1  ;;  %vm378_vm3 = vcmp.eq.s32.totalorder %v325_v35, 1 }
  0x86   : > { %v361_v45 = vsel %vm340_vm0, %v1426_v36, 0.0  ;;  %v362_v46 = vsel %vm341_vm1, %v1426_v36, 0.0  ;;  %v398_v47 = vsel %vm377_vm2, %v1429_v37, 0.0  ;;  %v399_v48 = vsel %vm378_vm3, %v1429_v37, 0.0 }
  0x87   : > { %v414_v50 = vadd.f32 %v398_v47, %v361_v45  ;;  %v415_v51 = vadd.f32 %v399_v48, %v362_v46  ;;  %vm430_vm4 = vcmp.eq.s32.totalorder %v324_v34, 16  ;;  %vm431_vm5 = vcmp.eq.s32.totalorder %v325_v35, 16 }
  0x88   : > { %v451_v52 = vsel %vm430_vm4, %v1446_v44, 0.0  ;;  %v452_v53 = vsel %vm431_vm5, %v1446_v44, 0.0  ;;  %vm483_vm6 = vcmp.eq.s32.totalorder %v324_v34, 17  ;;  %vm484_vm7 = vcmp.eq.s32.totalorder %v325_v35, 17  ;;  %v313_v34 = vld [vmem:[#allocation3 + $0x48] sm:$0xff]  ;;  %v314_v35 = vld [vmem:[#allocation3 + $0x50] sm:$0xff] }
  0x89   : > { %v467_v54 = vadd.f32 %v451_v52, %v414_v50  ;;  %v468_v55 = vadd.f32 %v452_v53, %v415_v51  ;;  %v504_v56 = vsel %vm483_vm6, %v1453_v49, 0.0  ;;  %v505_v57 = vsel %vm484_vm7, %v1453_v49, 0.0  ;;  %v315_v53 = vld [vmem:[#allocation3 + $0x58] sm:$0xff] }
  0x8a   : > { %vm342_vm8 = vcmp.eq.s32.totalorder %v326_v38, 0  ;;  %vm343_vm9 = vcmp.eq.s32.totalorder %v327_v39, 0  ;;  %vm379_vm10 = vcmp.eq.s32.totalorder %v326_v38, 1  ;;  %vm380_vm11 = vcmp.eq.s32.totalorder %v327_v39, 1 }
  0x8b   : > { %v520_v58 = vadd.f32 %v504_v56, %v467_v54  ;;  %v521_v59 = vadd.f32 %v505_v57, %v468_v55  ;;  %v363_v60 = vsel %vm342_vm8, %v1426_v36, 0.0  ;;  %v364_v61 = vsel %vm343_vm9, %v1426_v36, 0.0 }
  0x8c   : > { %v400_v62 = vsel %vm379_vm10, %v1429_v37, 0.0  ;;  %v401_v63 = vsel %vm380_vm11, %v1429_v37, 0.0  ;;  %vm432_vm12 = vcmp.eq.s32.totalorder %v326_v38, 16  ;;  %vm433_vm13 = vcmp.eq.s32.totalorder %v327_v39, 16 }
  0x8d   : > { %v835_v0 = vpack.c.bf16 %v521_v59, %v520_v58  ;;  %v416_v1 = vadd.f32 %v400_v62, %v363_v60  ;;  %v417_v2 = vadd.f32 %v401_v63, %v364_v61  ;;  %v453_v3 = vsel %vm432_vm12, %v1446_v44, 0.0 }
  0x8e   : > { %v454_v4 = vsel %vm433_vm13, %v1446_v44, 0.0  ;;  %vm485_vm14 = vcmp.eq.s32.totalorder %v326_v38, 17  ;;  %vm486_vm15 = vcmp.eq.s32.totalorder %v327_v39, 17  ;;  %vm344_vm0 = vcmp.eq.s32.totalorder %v1434_v40, 0 }
  0x8f   : > { %836 = vmatprep.subr.bf16.mxu0 %v835_v0  ;;  %v469_v5 = vadd.f32 %v453_v3, %v416_v1  ;;  %v470_v6 = vadd.f32 %v454_v4, %v417_v2  ;;  %v506_v7 = vsel %vm485_vm14, %v1453_v49, 0.0  ;;  %v507_v8 = vsel %vm486_vm15, %v1453_v49, 0.0 }
  0x90   : > { %838 = vmatpush3.bf16.msra.mxu0 %v835_v0  ;;  %vm345_vm1 = vcmp.eq.s32.totalorder %v1437_v41, 0  ;;  %v365_v9 = vsel %vm344_vm0, %v1426_v36, 0.0  ;;  %vm381_vm2 = vcmp.eq.s32.totalorder %v1434_v40, 1  ;;  %vm382_vm3 = vcmp.eq.s32.totalorder %v1437_v41, 1 }
  0x91   : > { %v522_v10 = vadd.f32 %v506_v7, %v469_v5  ;;  %v523_v11 = vadd.f32 %v507_v8, %v470_v6  ;;  %v366_v12 = vsel %vm345_vm1, %v1426_v36, 0.0  ;;  %v402_v13 = vsel %vm381_vm2, %v1429_v37, 0.0  ;;  %v316_v7 = vld [vmem:[#allocation3 + $0x60] sm:$0xff] }
  0x92   : > { %v403_v14 = vsel %vm382_vm3, %v1429_v37, 0.0  ;;  %v418_v15 = vadd.f32 %v402_v13, %v365_v9  ;;  %vm434_vm4 = vcmp.eq.s32.totalorder %v1434_v40, 16  ;;  %vm435_vm5 = vcmp.eq.s32.totalorder %v1437_v41, 16 }
  0x93   : > { %v839_v16 = vpack.c.bf16 %v523_v11, %v522_v10  ;;  %v419_v17 = vadd.f32 %v403_v14, %v366_v12  ;;  %v455_v18 = vsel %vm434_vm4, %v1446_v44, 0.0  ;;  %v456_v19 = vsel %vm435_vm5, %v1446_v44, 0.0  ;;  %v317_v14 = vld [vmem:[#allocation3 + $0x68] sm:$0xff] }
  0x94   : > { %v471_v20 = vadd.f32 %v455_v18, %v418_v15  ;;  %vm487_vm6 = vcmp.eq.s32.totalorder %v1434_v40, 17  ;;  %vm488_vm7 = vcmp.eq.s32.totalorder %v1437_v41, 17  ;;  %vm346_vm8 = vcmp.eq.s32.totalorder %v1440_v42, 0 }
  0x95   : > { %840 = vmatprep.subr.bf16.mxu0 %v839_v16  ;;  %v472_v21 = vadd.f32 %v456_v19, %v419_v17  ;;  %v508_v22 = vsel %vm487_vm6, %v1453_v49, 0.0  ;;  %v509_v23 = vsel %vm488_vm7, %v1453_v49, 0.0  ;;  %vm347_vm9 = vcmp.eq.s32.totalorder %v1443_v43, 0 }
  0x96   : > { %842 = vmatpush3.bf16.msra.mxu0 %v839_v16  ;;  %v524_v24 = vadd.f32 %v508_v22, %v471_v20  ;;  %v367_v25 = vsel %vm346_vm8, %v1426_v36, 0.0  ;;  %v368_v26 = vsel %vm347_vm9, %v1426_v36, 0.0  ;;  %vm383_vm10 = vcmp.eq.s32.totalorder %v1440_v42, 1 }
  0x97   : > { %v525_v27 = vadd.f32 %v509_v23, %v472_v21  ;;  %vm384_vm11 = vcmp.eq.s32.totalorder %v1443_v43, 1  ;;  %v404_v28 = vsel %vm383_vm10, %v1429_v37, 0.0  ;;  %vm436_vm12 = vcmp.eq.s32.totalorder %v1440_v42, 16 }
  0x98   : > { %v405_v31 = vsel %vm384_vm11, %v1429_v37, 0.0  ;;  %v420_v32 = vadd.f32 %v404_v28, %v367_v25  ;;  %vm437_vm13 = vcmp.eq.s32.totalorder %v1443_v43, 16  ;;  %v457_v33 = vsel %vm436_vm12, %v1446_v44, 0.0  ;;  %v319_v28 = vld [vmem:[#allocation3 + $0x78] sm:$0xff] }
  0x99   : > { %v843_v38 = vpack.c.bf16 %v525_v27, %v524_v24  ;;  %v421_v39 = vadd.f32 %v405_v31, %v368_v26  ;;  %v458_v40 = vsel %vm437_vm13, %v1446_v44, 0.0  ;;  %vm489_vm14 = vcmp.eq.s32.totalorder %v1440_v42, 17  ;;  %v318_v27 = vld [vmem:[#allocation3 + $0x70] sm:$0xff] }
  0x9a   : > { %v473_v41 = vadd.f32 %v457_v33, %v420_v32  ;;  %vm490_vm15 = vcmp.eq.s32.totalorder %v1443_v43, 17  ;;  %v510_v45 = vsel %vm489_vm14, %v1453_v49, 0.0  ;;  %v332_v46 = vsub.s32 %v312_v30, %v1419_v29 }
  0x9b   : > { %844 = vmatprep.subr.bf16.mxu0 %v843_v38  ;;  %v474_v47 = vadd.f32 %v458_v40, %v421_v39  ;;  %v511_v48 = vsel %vm490_vm15, %v1453_v49, 0.0  ;;  %v333_v50 = vsub.s32 %v313_v34, %v1419_v29  ;;  %v334_v51 = vsub.s32 %v314_v35, %v1419_v29 }
  0x9c   : > { %846 = vmatpush3.bf16.msra.mxu0 %v843_v38  ;;  %v526_v52 = vadd.f32 %v510_v45, %v473_v41  ;;  %vm348_vm0 = vcmp.eq.s32.totalorder %v332_v46, 0  ;;  %vm385_vm1 = vcmp.eq.s32.totalorder %v332_v46, 1  ;;  %vm438_vm2 = vcmp.eq.s32.totalorder %v332_v46, 16 }
  0x9d   : > { %v527_v42 = vadd.f32 %v511_v48, %v474_v47  ;;  %vm349_vm3 = vcmp.eq.s32.totalorder %v333_v50, 0  ;;  %v369_v43 = vsel %vm348_vm0, %v1426_v36, 0.0  ;;  %vm386_vm4 = vcmp.eq.s32.totalorder %v333_v50, 1 }
  0x9e   : > { %v370_v54 = vsel %vm349_vm3, %v1426_v36, 0.0  ;;  %v406_v55 = vsel %vm385_vm1, %v1429_v37, 0.0  ;;  %v407_v56 = vsel %vm386_vm4, %v1429_v37, 0.0  ;;  %vm439_vm5 = vcmp.eq.s32.totalorder %v333_v50, 16 }
  0x9f   : > { %v847_v57 = vpack.c.bf16 %v527_v42, %v526_v52  ;;  %v422_v58 = vadd.f32 %v406_v55, %v369_v43  ;;  %v423_v59 = vadd.f32 %v407_v56, %v370_v54  ;;  %v459_v60 = vsel %vm438_vm2, %v1446_v44, 0.0 }
  0xa0   : > { %v460_v61 = vsel %vm439_vm5, %v1446_v44, 0.0  ;;  %vm491_vm6 = vcmp.eq.s32.totalorder %v332_v46, 17  ;;  %vm492_vm7 = vcmp.eq.s32.totalorder %v333_v50, 17  ;;  %v335_v62 = vsub.s32 %v315_v53, %v1419_v29 }
  0xa1   : > { %848 = vmatprep.subr.bf16.mxu0 %v847_v57  ;;  %v475_v63 = vadd.f32 %v459_v60, %v422_v58  ;;  %v476_v0 = vadd.f32 %v460_v61, %v423_v59  ;;  %v512_v1 = vsel %vm491_vm6, %v1453_v49, 0.0  ;;  %v513_v2 = vsel %vm492_vm7, %v1453_v49, 0.0  ;;  %v539_v61 = vld [vmem:[%s213_s6 + $0x8] sm:$0xff] }
  0xa2   : > { %850 = vmatpush3.bf16.msra.mxu0 %v847_v57  ;;  %vm350_vm8 = vcmp.eq.s32.totalorder %v334_v51, 0  ;;  %vm351_vm9 = vcmp.eq.s32.totalorder %v335_v62, 0  ;;  %vm387_vm10 = vcmp.eq.s32.totalorder %v334_v51, 1  ;;  %vm388_vm11 = vcmp.eq.s32.totalorder %v335_v62, 1 }
  0xa3   : > { %v528_v3 = vadd.f32 %v512_v1, %v475_v63  ;;  %v529_v4 = vadd.f32 %v513_v2, %v476_v0  ;;  %v371_v5 = vsel %vm350_vm8, %v1426_v36, 0.0  ;;  %v372_v6 = vsel %vm351_vm9, %v1426_v36, 0.0 }
  0xa4   : > { %v408_v8 = vsel %vm387_vm10, %v1429_v37, 0.0  ;;  %v409_v9 = vsel %vm388_vm11, %v1429_v37, 0.0  ;;  %vm440_vm12 = vcmp.eq.s32.totalorder %v334_v51, 16  ;;  %vm441_vm13 = vcmp.eq.s32.totalorder %v335_v62, 16 }
  0xa5   : > { %v851_v10 = vpack.c.bf16 %v529_v4, %v528_v3  ;;  %v424_v11 = vadd.f32 %v408_v8, %v371_v5  ;;  %v425_v12 = vadd.f32 %v409_v9, %v372_v6  ;;  %v461_v13 = vsel %vm440_vm12, %v1446_v44, 0.0 }
  0xa6   : > { %v462_v15 = vsel %vm441_vm13, %v1446_v44, 0.0  ;;  %vm493_vm14 = vcmp.eq.s32.totalorder %v334_v51, 17  ;;  %vm494_vm15 = vcmp.eq.s32.totalorder %v335_v62, 17  ;;  %v336_v16 = vsub.s32 %v316_v7, %v1419_v29  ;;  %v537_v62 = vld [vmem:[#allocation2 + $0x8] sm:$0xff] }
  0xa7   : > { %852 = vmatprep.subr.bf16.mxu0 %v851_v10  ;;  %v477_v17 = vadd.f32 %v461_v13, %v424_v11  ;;  %v478_v18 = vadd.f32 %v462_v15, %v425_v12  ;;  %v514_v19 = vsel %vm493_vm14, %v1453_v49, 0.0  ;;  %v515_v20 = vsel %vm494_vm15, %v1453_v49, 0.0 }
  0xa8   : > { %854 = vmatpush3.bf16.msra.mxu0 %v851_v10  ;;  %v337_v21 = vsub.s32 %v317_v14, %v1419_v29  ;;  %vm352_vm0 = vcmp.eq.s32.totalorder %v336_v16, 0  ;;  %vm389_vm1 = vcmp.eq.s32.totalorder %v336_v16, 1  ;;  %vm442_vm2 = vcmp.eq.s32.totalorder %v336_v16, 16 }
  0xa9   : > { %v530_v22 = vadd.f32 %v514_v19, %v477_v17  ;;  %v531_v23 = vadd.f32 %v515_v20, %v478_v18  ;;  %v373_v24 = vsel %vm352_vm0, %v1426_v36, 0.0  ;;  %v410_v25 = vsel %vm389_vm1, %v1429_v37, 0.0 }
  0xaa   : > { %vm353_vm3 = vcmp.eq.s32.totalorder %v337_v21, 0  ;;  %vm390_vm4 = vcmp.eq.s32.totalorder %v337_v21, 1  ;;  %v426_v26 = vadd.f32 %v410_v25, %v373_v24  ;;  %vm443_vm5 = vcmp.eq.s32.totalorder %v337_v21, 16 }
  0xab   : > { %v855_v30 = vpack.c.bf16 %v531_v23, %v530_v22  ;;  %v374_v31 = vsel %vm353_vm3, %v1426_v36, 0.0  ;;  %v411_v32 = vsel %vm390_vm4, %v1429_v37, 0.0  ;;  %v463_v33 = vsel %vm442_vm2, %v1446_v44, 0.0 }
  0xac   : > { %v427_v34 = vadd.f32 %v411_v32, %v374_v31  ;;  %v464_v35 = vsel %vm443_vm5, %v1446_v44, 0.0  ;;  %v479_v38 = vadd.f32 %v463_v33, %v426_v26  ;;  %vm495_vm6 = vcmp.eq.s32.totalorder %v336_v16, 17 }
  0xad   : > { %856 = vmatprep.subr.bf16.mxu0 %v855_v30  ;;  %vm496_vm7 = vcmp.eq.s32.totalorder %v337_v21, 17  ;;  %v516_v39 = vsel %vm495_vm6, %v1453_v49, 0.0  ;;  %v338_v40 = vsub.s32 %v318_v27, %v1419_v29  ;;  %v339_v41 = vsub.s32 %v319_v28, %v1419_v29 }
  0xae   : > { %858 = vmatpush3.bf16.msra.mxu0 %v855_v30  ;;  %v480_v45 = vadd.f32 %v464_v35, %v427_v34  ;;  %v517_v46 = vsel %vm496_vm7, %v1453_v49, 0.0  ;;  %v532_v47 = vadd.f32 %v516_v39, %v479_v38 }
  0xaf   : > { %vm354_vm8 = vcmp.eq.s32.totalorder %v338_v40, 0  ;;  %vm355_vm9 = vcmp.eq.s32.totalorder %v339_v41, 0  ;;  %vm391_vm10 = vcmp.eq.s32.totalorder %v338_v40, 1  ;;  %vm392_vm11 = vcmp.eq.s32.totalorder %v339_v41, 1 }
  0xb0   : > { %v533_v48 = vadd.f32 %v517_v46, %v480_v45  ;;  %v375_v50 = vsel %vm354_vm8, %v1426_v36, 0.0  ;;  %v376_v51 = vsel %vm355_vm9, %v1426_v36, 0.0  ;;  %v412_v52 = vsel %vm391_vm10, %v1429_v37, 0.0 }
  0xb1   : > { %v413_v42 = vsel %vm392_vm11, %v1429_v37, 0.0  ;;  %v428_v43 = vadd.f32 %v412_v52, %v375_v50  ;;  %vm444_vm12 = vcmp.eq.s32.totalorder %v338_v40, 16  ;;  %vm445_vm13 = vcmp.eq.s32.totalorder %v339_v41, 16 }
  0xb2   : > { %v859_v29 = vpack.c.bf16 %v533_v48, %v532_v47  ;;  %v429_v53 = vadd.f32 %v413_v42, %v376_v51  ;;  %v465_v54 = vsel %vm444_vm12, %v1446_v44, 0.0  ;;  %v466_v55 = vsel %vm445_vm13, %v1446_v44, 0.0  ;;  %v536_v44 = vld [vmem:[#allocation2] sm:$0xff] }
  0xb3   : > { %v481_v56 = vadd.f32 %v465_v54, %v428_v43  ;;  %vm497_vm14 = vcmp.eq.s32.totalorder %v338_v40, 17  ;;  %vm498_vm15 = vcmp.eq.s32.totalorder %v339_v41, 17 }
  0xb4   : > { %860 = vmatprep.subr.bf16.mxu0 %v859_v29  ;;  %v482_v57 = vadd.f32 %v466_v55, %v429_v53  ;;  %v518_v36 = vsel %vm497_vm14, %v1453_v49, 0.0  ;;  %v519_v58 = vsel %vm498_vm15, %v1453_v49, 0.0 }
  0xb5   : > { %862 = vmatpush3.bf16.msra.mxu0 %v859_v29  ;;  %v534_v37 = vadd.f32 %v518_v36, %v481_v56 }
  0xb6   : > { %v535_v59 = vadd.f32 %v519_v58, %v482_v57 }
  0xb8   : > { %v863_v60 = vpack.c.bf16 %v535_v59, %v534_v37 }
  0xba   : > { %864 = vmatprep.subr.bf16.mxu0 %v863_v60 }
  0xbb   : > { %866 = vmatpush3.bf16.msra.mxu0 %v863_v60 }
  0xbe   : > { %833 = vmatmul.mubr.f32.vlgmr.msra.gmra.mrb[0].mxu0 %v539_v61 }
 0x18d   : > { %619 = sbr.rel (%p776_p3) target bundleno = 406 (0x196), region = 48 }
 0x191   : > { %v834_v63 = vpop.f32.mrb[0].mxu0 }
 0x192   : > { %v616_v0 = vadd.f32 %v834_v63, %v537_v62  ;;  %v606_v1 = vpop.f32.mrb[1].mxu0 }
 0x193   : > { %v615_v2 = vadd.f32 %v606_v1, %v536_v44 }
 0x194   : > { %621 = vst [vmem:[%s1403_s30 + $0x8] sm:$0xff] %v616_v0 }
 0x195   : > { %620 = vst [vmem:[%s1403_s30] sm:$0xff] %v615_v2 }
 0x196 PF: > { %625 = sbr.rel (%p253_p8) target bundleno = 413 (0x19d), region = 52  ;;  %626 = vst [vmem:[#allocation2] sm:$0xff] (!%p253_p8), %v615_v2  ;;  %627 = vst [vmem:[#allocation2 + $0x8] sm:$0xff] (!%p253_p8), %v616_v0 }
 0x19d PF: > { %p629_p5 = pnand %p770_p2, %p253_p8 }
 0x19e   : > { %v633_v49 = vld [vmem:[#allocation2] sm:$0xff] (!%p629_p5)  ;;  %v634_v3 = vld [vmem:[#allocation2 + $0x8] sm:$0xff] (!%p629_p5) }
 0x19f   : > { %632 = sbr.rel (%p629_p5) target bundleno = 422 (0x1a6), region = 56  ;;  %635 = vst [vmem:[%s1403_s30] sm:$0xff] (!%p629_p5), %v633_v49  ;;  %636 = vst [vmem:[%s1403_s30 + $0x8] sm:$0xff] (!%p629_p5), %v634_v3 }
 0x1a6 PF: > { %s779_s23 = sshll.u32 %s1146_s13, 7  ;;  %s650_s24 = sshll.u32 %s1403_s30, 4  ;;  %s1559_s24 = int_to_ptr.vmem [resolvable:$true] %s650_s24 }
 0x1a7   : > { %s1556_s12 = scalar_lea.hbm %s1628_s5, %s779_s23  ;;  %s1563_s15 = scalar_lea.sflag [#allocation9], %s240_s20 }
 0x1a8   : > { %s1034_s19 = scalar_lea.vmem %s1559_s24, 256  ;;  %p1645_p13 = scmp.ne.s32.totalorder %s1640_s9, 0 }
 0x1a9   : > { %p1035_p12 = scmp.ne.s32.totalorder %s1559_s24, %s1034_s19  ;;  %s1167_s13 = smov [#allocation10]  }
 0x1aa   : > { %s1038_s28 = sshll.u32 %s1167_s13, 4  ;;  %s1039_s28 = int_to_ptr.vmem [resolvable:$false] %s1038_s28 }
 0x1ab   : > { %p1036_p0 = pnand %p1035_p12, %p1645_p13  ;;  %s1040_s17 = scalar_lea.vmem %s1039_s28, 512 }
 0x1ac   : > { %p1041_p6 = scmp.lt.s32.totalorder %s1559_s24, %s1039_s28  ;;  %p1042_p9 = scmp.lt.s32.totalorder %s1040_s17, %s1034_s19 }
 0x1ad   : > { %p1037_p4 = pneg %p1036_p0 }
 0x1ae   : > { %p1043_p10 = por %p1042_p9, %p1041_p6 }
 0x1b0   : > { %p1044_p1 = pnand %p1043_p10, %p1037_p4 }
 0x1b2   : > { %1047 = shalt.err (!%p1044_p1)
}
 0x1b3   : > { %s1048_s20 = scalar_lea.hbm %s1556_s12, 256  ;;  %s1052_s22 = scalar_lea.hbm %s1628_s5, 512 }
 0x1b4   : > { %p1049_p7 = scmp.ne.s32.totalorder %s1556_s12, %s1048_s20  ;;  %p1053_p2 = scmp.lt.u32.totalorder %s1556_s12, %s1628_s5 }
 0x1b5   : > { %p1054_p3 = scmp.lt.u32.totalorder %s1052_s22, %s1048_s20  ;;  %p1056_p12 = scmp.lt.u32.totalorder %s1048_s20, %s1556_s12 }
 0x1b6   : > { %p1050_p8 = pnand %p1049_p7, %p1645_p13 }
 0x1b7   : > { %p1055_p5 = por %p1054_p3, %p1053_p2 }
 0x1b8   : > { %p1051_p11 = pneg %p1050_p8 }
 0x1b9   : > { %p1057_p0 = por %p1056_p12, %p1055_p5 }
 0x1bb   : > { %p1058_p4 = pnand %p1057_p0, %p1051_p11 }
 0x1bd   : > { %1061 = shalt.err (!%p1058_p4)
}
 0x1be   : > { %s1168_s23 = smov 128   ;;  %s1169_s6 = smov 256  }
 0x1bf   : > { %s1170_s27 = smov 8  }
 0x1c0   : > { %871 = dma.vmem_to_hbm [thread:$0]  (%p1645_p13), %s1559_s24, 256, %s1556_s12, %s1563_s15, %s1168_s23, %s1169_s6, %s1170_s27  }
 0x1c1 PF: > { %p884_p6 = scmp.ge.s32.totalorder %s1158_s16, 2  ;;  %s665_s19 = sand.u32 1, %s1118_s0  }
 0x1c2   : > { %p1646_p9 = scmp.ne.s32.totalorder %s1641_s21, 0  ;;  %s666_s13 = scalar_lea.sflag [#allocation9], %s665_s19 }
 0x1c4   : > { %p880_p10 = pnand %p884_p6, %p1646_p9 }
 0x1c6   : > { %1113 = dma.done.wait (!%p880_p10), %s666_s13, 256  }
 0x1c7   : > { %1115 = vsyncadd (!%p880_p10), %s666_s13, 4294967040  ;;  %s29_s16 = sadd.s32 1, %s1158_s16   ;;  %s1647_s13 = sld [smem:[#allocation16_spill]] }
 0x1c8   : > { %p26_p1 = scmp.ge.s32.totalorder %s29_s16, 6   ;;  %s1648_s24 = sld [smem:[#allocation17_spill]] }
 0x1c9   : > { %s1649_s15 = sld [smem:[#allocation18_spill]]  ;;  %s1650_s0 = smov %s1122_s1 }
 0x1ca   : > { %s1651_s1 = smov %s1126_s8  ;;  %s1652_s8 = smov %s1302_s7 }
 0x1cb   : > { %s1653_s9 = smov %s1134_s10  ;;  %s1654_s10 = smov %s1138_s11 }
 0x1cc   : > { %s1655_s11 = smov %s1327_s18  ;;  %s1656_s12 = smov %s1150_s14 }
 0x1cd   :  { %28 = sbr.rel (!%p26_p1) target bundleno = 31 (0x1f), region = 103 }
 0x1ce   : > { %s1657_s14 = smov %s1648_s24 }
 0x1d4   :  { %671 = vsyncpa [#allocation8], 1 }
 0x1d5   :  { %673 = vsyncpa [#allocation8 + $0x1], 1 }
 0x1d6   :  { %674 = vsyncpa [#allocation9], 1 }
 0x1d7   :  { %676 = vsyncpa [#allocation9 + $0x1], 1 }

</bundles_post_ra>
